<compile_context>
chip_gen: v6e
topology: v6e:2x2x1
jax: 0.10.0
libtpu: 0.0.40
codegen_flags: <defaults>
</compile_context>

<pallas_src>
import functools

import jax
import jax.numpy as jnp
from jax.experimental import pallas as pl
from jax.experimental.pallas import tpu as pltpu


# Per-grid-step overhead is ~0.35 us; don't split tiles below this just to get
# extra pipeline depth / core parallelism.
_MIN_TILE_BYTES = 512 * 1024
# Bound divisor searches so pathological (large prime) extents stay cheap.
_DIVISOR_SCAN_LIMIT = 65536


def _vmem_budgets():
    """Per-generation (working_set_budget, vmem_limit_bytes).

    v5e/v6e have 128 MiB VMEM per TensorCore -> big blocks amortise the
    per-step overhead; v7x has only 64 MiB/TC so stay conservative.
    """
    vmem_bytes = 0
    try:
        info = pltpu.get_tpu_info()
        vmem_bytes = int(getattr(info, "vmem_capacity_bytes", 0) or 0)
    except Exception:
        vmem_bytes = 0
    if vmem_bytes >= 128 * 1024 * 1024:            # v5e / v6e
        return 48 * 1024 * 1024, 96 * 1024 * 1024
    return 20 * 1024 * 1024, 44 * 1024 * 1024      # v7x / unknown: conservative


def _sublane_multiple(dtype):
    itemsize = jnp.dtype(dtype).itemsize
    return max(8, 32 // max(1, itemsize))   # 8 for f32, 16 for bf16, 32 for i8


def _round_up(x, m):
    return (x + m - 1) // m * m


def _largest_divisor_leq(n, cap):
    cap = int(max(1, min(n, cap)))
    lo = max(1, cap - _DIVISOR_SCAN_LIMIT)
    for d in range(cap, lo - 1, -1):
        if n % d == 0:
            return d
    return 1


def _largest_128_divisor_leq(n, cap):
    """Largest d <= cap with d | n and (d % 128 == 0 or d == n); None if none."""
    cap = int(cap)
    if cap < 1:
        return None
    if n % 128 != 0:
        return n if n <= cap else None
    if cap < 128:
        return None
    kmax = min(n, cap) // 128
    lo = max(1, kmax - _DIVISOR_SCAN_LIMIT)
    for k in range(kmax, lo - 1, -1):
        if n % (128 * k) == 0:
            return 128 * k
    return 128   # n % 128 == 0 and cap >= 128, so 128 always divides n.


# --------------------------------------------------------------------------
# Kernels
# --------------------------------------------------------------------------
def _concat_dma_kernel(offsets, sizes, tile_r, tile_t, *refs):
    """Inputs live in HBM (pl.ANY); DMA each one straight into its sublane
    offset of the auto-pipelined output VMEM block.  No staging copy, no
    masked vector stores for misaligned C offsets."""
    n = len(sizes)
    in_refs = refs[:n]
    out_ref = refs[n]
    sem = refs[n + 1]
    r0 = pl.multiple_of(pl.program_id(0) * tile_r, tile_r)
    t0 = pl.multiple_of(pl.program_id(1) * tile_t, tile_t)
    copies = []
    for i, (ref, off, c) in enumerate(zip(in_refs, offsets, sizes)):
        cp = pltpu.make_async_copy(
            ref.at[pl.ds(r0, tile_r), :, pl.ds(t0, tile_t)],
            out_ref.at[:, off:off + c, :],
            sem.at[i],
        )
        cp.start()
        copies.append(cp)
    for cp in copies:
        cp.wait()


def _concat_sublane_kernel(offsets, sizes, *refs):
    """Staged fallback: (tile_r, C_i, tile_t) blocks copied into the C-slice of
    the output block (sublane axis), keeping the lane axis dense."""
    out_ref = refs[-1]
    for ref, off, c in zip(refs[:-1], offsets, sizes):
        out_ref[:, off:off + c, :] = ref[...]


def _concat_lane_kernel(offsets, sizes, *refs):
    """2-D blocks (tile_r, C_i) copied into the lane-slice of the output."""
    out_ref = refs[-1]
    for ref, off, c in zip(refs[:-1], offsets, sizes):
        out_ref[:, off:off + c] = ref[...]


# --------------------------------------------------------------------------
# Tile choosers (padding- and generation-aware)
# --------------------------------------------------------------------------
def _choose_tiles_dma(rows, c_pad, trailing, itemsize, budget):
    """(tile_r, tile_t) for the DMA-direct path.  tile_r | rows and
    tile_t | trailing so every manual DMA is exactly in bounds; tile_t is a
    multiple of 128 (or the full extent) so the output block stays lane-dense.
    Working set = double-buffered output block only.  None if nothing fits."""

    def step_bytes(tr, tt):
        return 2 * tr * c_pad * _round_up(tt, 128) * itemsize

    if step_bytes(1, trailing) <= budget:
        cap_r = max(1, budget // step_bytes(1, trailing))
        tile_r = rows if rows <= cap_r else _largest_divisor_leq(rows, cap_r)
        tile_t = trailing
    else:
        tile_r = 1
        cap_t = budget // (2 * c_pad * itemsize)
        tile_t = _largest_128_divisor_leq(trailing, cap_t)
        if tile_t is None:
            return None

    # Expose >= 2 grid steps (pipeline depth; also lets v7x shard the grid over
    # its two TensorCores) whenever each half-step still amortises the ~0.35us
    # per-step overhead.
    if rows // tile_r == 1 and trailing // tile_t == 1:
        if tile_r > 1 and step_bytes((tile_r + 1) // 2, tile_t) >= _MIN_TILE_BYTES:
            tile_r = _largest_divisor_leq(rows, max(1, tile_r // 2))
        elif tile_t > 128:
            half_t = _largest_128_divisor_leq(trailing, tile_t // 2)
            if half_t is not None and step_bytes(tile_r, half_t) >= _MIN_TILE_BYTES:
                tile_t = half_t
    return tile_r, tile_t


def _choose_tiles_vec(rows, c_sizes, c_total, trailing, itemsize, sub, budget):
    """(tile_r, tile_t) for the staged vector-copy path (inputs + output all
    double-buffered in VMEM).  Padding-aware: every C_i rounds up to the
    sublane multiple and the lane extent rounds up to 128.  None if even a
    (1, C_total, 128) block does not fit (huge C_total)."""
    c_pad_sum = sum(_round_up(c, sub) for c in c_sizes) + _round_up(c_total, sub)

    def step_bytes(tr, tt):
        return 2 * tr * c_pad_sum * _round_up(tt, 128) * itemsize

    tile_r, tile_t = rows, trailing
    while tile_r > 1 and step_bytes(tile_r, tile_t) > budget:
        tile_r = max(1, tile_r // 2)
    while tile_t > 128 and step_bytes(tile_r, tile_t) > budget:
        tile_t = max(128, _round_up(tile_t // 2, 128))
    if step_bytes(tile_r, tile_t) > budget:
        return None
    return tile_r, tile_t


def _choose_row_tile_2d(rows, c_sizes, c_total, itemsize, sub, budget):
    """tile_r for the 2-D lane-concat path (padding-aware).  None if a single
    row of blocks does not fit."""
    c_pad_sum = (sum(_round_up(c, 128) for c in c_sizes)
                 + _round_up(c_total, 128))

    def step_bytes(tr):
        return 2 * _round_up(tr, sub) * c_pad_sum * itemsize

    if step_bytes(rows) <= budget:
        tile_r = rows
        while (tile_r >= 2 * sub and pl.cdiv(rows, tile_r) < 2
               and step_bytes(max(sub, (tile_r // 2) // sub * sub)) >= _MIN_TILE_BYTES):
            tile_r = max(sub, (tile_r // 2) // sub * sub)
        return tile_r
    per_sub = 2 * sub * c_pad_sum * itemsize
    n_sub = budget // per_sub
    if n_sub < 1:
        return None
    return min(rows, n_sub * sub)


# --------------------------------------------------------------------------
# pallas_call wrappers
# --------------------------------------------------------------------------
def _call_dma_concat(xs3, c_sizes, c_offsets, rows, c_total, trailing,
                     tile_r, tile_t, dtype, vmem_limit):
    kernel = functools.partial(_concat_dma_kernel, tuple(c_offsets),
                               tuple(c_sizes), tile_r, tile_t)
    return pl.pallas_call(
        kernel,
        out_shape=jax.ShapeDtypeStruct((rows, c_total, trailing), dtype),
        grid=(rows // tile_r, trailing // tile_t),
        in_specs=[pl.BlockSpec(memory_space=pl.ANY) for _ in xs3],
        out_specs=pl.BlockSpec((tile_r, c_total, tile_t),
                               lambda r, t: (r, 0, t)),
        scratch_shapes=[pltpu.SemaphoreType.DMA((len(xs3),))],
        compiler_params=pltpu.CompilerParams(
            dimension_semantics=("parallel", "parallel"),
            vmem_limit_bytes=vmem_limit),
    )(*xs3)


def _call_vec_concat(xs3, c_sizes, c_offsets, rows, c_total, trailing,
                     tile_r, tile_t, dtype, vmem_limit):
    kernel = functools.partial(_concat_sublane_kernel, tuple(c_offsets),
                               tuple(c_sizes))
    return pl.pallas_call(
        kernel,
        out_shape=jax.ShapeDtypeStruct((rows, c_total, trailing), dtype),
        grid=(pl.cdiv(rows, tile_r), pl.cdiv(trailing, tile_t)),
        in_specs=[pl.BlockSpec((tile_r, c, tile_t), lambda r, t: (r, 0, t))
                  for c in c_sizes],
        out_specs=pl.BlockSpec((tile_r, c_total, tile_t),
                               lambda r, t: (r, 0, t)),
        compiler_params=pltpu.CompilerParams(
            dimension_semantics=("parallel", "parallel"),
            vmem_limit_bytes=vmem_limit),
    )(*xs3)


def _call_lane_concat(xs2, sizes, offsets, rows, c_total, tile_r, dtype,
                      vmem_limit):
    kernel = functools.partial(_concat_lane_kernel, tuple(offsets),
                               tuple(sizes))
    return pl.pallas_call(
        kernel,
        out_shape=jax.ShapeDtypeStruct((rows, c_total), dtype),
        grid=(pl.cdiv(rows, tile_r),),
        in_specs=[pl.BlockSpec((tile_r, c), lambda r: (r, 0)) for c in sizes],
        out_specs=pl.BlockSpec((tile_r, c_total), lambda r: (r, 0)),
        compiler_params=pltpu.CompilerParams(
            dimension_semantics=("parallel",),
            vmem_limit_bytes=vmem_limit),
    )(*xs2)


# --------------------------------------------------------------------------
# Dispatcher
# --------------------------------------------------------------------------
def safe_cat_pallas(xs, dim):
    """Pallas equivalent of torch.cat(tuple(xs), dim=dim)."""
    xs = tuple(xs)
    assert len(xs) >= 1
    ndim = xs[0].ndim
    d = dim % ndim
    dtype = xs[0].dtype
    itemsize = jnp.dtype(dtype).itemsize

    # Drop zero-size operands (torch.cat ignores them).
    nonempty = tuple(x for x in xs if int(x.shape[d]) > 0)
    if not nonempty:
        return jnp.concatenate(xs, axis=d)
    xs = nonempty

    base_shape = xs[0].shape
    for x in xs:
        assert x.ndim == ndim and x.dtype == dtype
        assert tuple(s for i, s in enumerate(x.shape) if i != d) == \
               tuple(s for i, s in enumerate(base_shape) if i != d)

    rows = 1
    for s in base_shape[:d]:
        rows *= int(s)
    trailing = 1
    for s in base_shape[d + 1:]:
        trailing *= int(s)

    c_sizes = [int(x.shape[d]) for x in xs]
    c_total = sum(c_sizes)
    c_offsets, off = [], 0
    for c in c_sizes:
        c_offsets.append(off)
        off += c

    out_shape_nd = list(base_shape)
    out_shape_nd[d] = c_total
    out_shape_nd = tuple(out_shape_nd)

    if len(xs) == 1:
        return xs[0].reshape(out_shape_nd)

    budget, vmem_limit = _vmem_budgets()
    sub = _sublane_multiple(dtype)

    # ---- Concat along the last dim: lane-axis copy, only when lane-dense. ----
    if trailing == 1:
        if c_total >= 128 and all(o % 128 == 0 for o in c_offsets):
            tile_r = _choose_row_tile_2d(rows, c_sizes, c_total, itemsize, sub,
                                         budget)
            if tile_r is not None:
                xs2 = [x.reshape(rows, c) for x, c in zip(xs, c_sizes)]
                out2 = _call_lane_concat(xs2, c_sizes, c_offsets, rows, c_total,
                                         tile_r, dtype, vmem_limit)
                return out2.reshape(out_shape_nd)
        # TODO(synk): lane-sparse / 128-misaligned last-dim concat -- masked
        # partial stores would bind before HBM; XLA's native concat wins here.
        return jnp.concatenate(xs, axis=d)

    # ---- Tiny trailing dim: fuse it into the lane axis if it stays aligned. ----
    if trailing < 128:
        f_sizes = [c * trailing for c in c_sizes]
        f_offsets = [o * trailing for o in c_offsets]
        f_total = c_total * trailing
        if f_total >= 128 and all(o % 128 == 0 for o in f_offsets):
            tile_r = _choose_row_tile_2d(rows, f_sizes, f_total, itemsize, sub,
                                         budget)
            if tile_r is not None:
                xs2 = [x.reshape(rows, fc) for x, fc in zip(xs, f_sizes)]
                out2 = _call_lane_concat(xs2, f_sizes, f_offsets, rows, f_total,
                                         tile_r, dtype, vmem_limit)
                return out2.reshape(out_shape_nd)
        # Lane extent < 128 wastes >90% of every vreg / DMA burst; XLA wins.
        return jnp.concatenate(xs, axis=d)

    # ---- General path: sublane-axis concat over (rows, C_i, trailing) views. --
    xs3 = [x.reshape(rows, c, trailing) for x, c in zip(xs, c_sizes)]
    c_pad = _round_up(c_total, sub)

    tiles = _choose_tiles_dma(rows, c_pad, trailing, itemsize, budget)
    if tiles is not None:
        tile_r, tile_t = tiles
        try:
            out3 = _call_dma_concat(xs3, c_sizes, c_offsets, rows, c_total,
                                    trailing, tile_r, tile_t, dtype, vmem_limit)
            return out3.reshape(out_shape_nd)
        except Exception:
            # Guarded fast path: if this Mosaic build rejects sublane-offset DMA
            # destinations, fall through to the staged vector-copy kernel.
            pass

    tiles = _choose_tiles_vec(rows, c_sizes, c_total, trailing, itemsize, sub,
                              budget)
    if tiles is None:
        # C_total too wide for even a (1, C_total, 128) block in VMEM.
        return jnp.concatenate(xs, axis=d)
    tile_r, tile_t = tiles
    out3 = _call_vec_concat(xs3, c_sizes, c_offsets, rows, c_total, trailing,
                            tile_r, tile_t, dtype, vmem_limit)
    return out3.reshape(out_shape_nd)


class FXSafeConcatPallas:
    """Mirrors FXSafeConcat: holds `d` and concatenates a list of arrays."""

    def __init__(self, d: int):
        self.d = d  # deterministic "parameter" (from orig_module.d)

    def __call__(self, x):
        return safe_cat_pallas(x, dim=self.d)


if __name__ == "__main__":
    key = jax.random.PRNGKey(0)
    k1, k2, k3 = jax.random.split(key, 3)

    # 1) NCHW channel concat (d=1): general DMA-direct sublane path.
    x1 = jax.random.normal(k1, (2, 4, 16, 16), dtype=jnp.float32)
    x2 = jax.random.normal(k2, (2, 6, 16, 16), dtype=jnp.float32)
    x3 = jax.random.normal(k3, (2, 2, 16, 16), dtype=jnp.float32)
    out = jax.block_until_ready(FXSafeConcatPallas(d=1)([x1, x2, x3]))
    ref = jnp.concatenate([x1, x2, x3], axis=1)
    assert out.shape == (2, 12, 16, 16) and jnp.array_equal(out, ref)

    # 2) Last-dim concat with 128-aligned offsets: lane-axis copy kernel.
    y1 = jax.random.normal(k1, (4, 8, 256), dtype=jnp.float32)
    y2 = jax.random.normal(k2, (4, 8, 128), dtype=jnp.float32)
    out_last = jax.block_until_ready(FXSafeConcatPallas(d=-1)([y1, y2]))
    assert jnp.array_equal(out_last, jnp.concatenate([y1, y2], axis=-1))

    # 3) Leading-dim concat (rows == 1): contiguous slabs via the DMA path.
    z1 = jax.random.normal(k1, (2, 4, 8, 8), dtype=jnp.float32)
    z2 = jax.random.normal(k2, (3, 4, 8, 8), dtype=jnp.float32)
    out_lead = jax.block_until_ready(FXSafeConcatPallas(d=0)([z1, z2]))
    assert jnp.array_equal(out_lead, jnp.concatenate([z1, z2], axis=0))

    # 4) Small trailing dim (H*W = 64): fused into the lane axis.
    w1 = jax.random.normal(k1, (2, 4, 8, 8), dtype=jnp.float32)
    w2 = jax.random.normal(k2, (2, 6, 8, 8), dtype=jnp.float32)
    out_fused = jax.block_until_ready(FXSafeConcatPallas(d=1)([w1, w2]))
    assert jnp.array_equal(out_fused, jnp.concatenate([w1, w2], axis=1))

    # 5) Lane-sparse last-dim concat: intentionally falls back to XLA concat.
    v1 = jax.random.normal(k1, (2, 4, 16, 5), dtype=jnp.float32)
    v2 = jax.random.normal(k2, (2, 4, 16, 3), dtype=jnp.float32)
    out_v = jax.block_until_ready(FXSafeConcatPallas(d=-1)([v1, v2]))
    assert jnp.array_equal(out_v, jnp.concatenate([v1, v2], axis=-1))

    print("KERNEL_OK")
</pallas_src>

<mosaic_0001>
module attributes {stable_mosaic.version = 11 : i64} {
  func.func @_concat_dma_kernel(%arg0: i32, %arg1: i32, %arg2: memref<2x4x256xf32, #tpu.memory_space<any>>, %arg3: memref<2x6x256xf32, #tpu.memory_space<any>>, %arg4: memref<2x2x256xf32, #tpu.memory_space<any>>, %arg5: memref<2x12x256xf32, #tpu.memory_space<vmem>>, %arg6: memref<3x!tpu.dma_semaphore, #tpu.memory_space<semaphore_mem>>) attributes {dimension_semantics = [#tpu.dimension_semantics<parallel>, #tpu.dimension_semantics<parallel>], iteration_bounds = array<i64: 1, 1>, scalar_prefetch = 0 : i64, scratch_operands = 1 : i64, tpu.core_type = #tpu.core_type<tc>, window_params = [{}, {}, {}, {transform_indices = @transform_3, window_bounds = array<i64: 2, 12, 256>}]} {
    %c2_i32 = arith.constant 2 : i32
    %0 = arith.muli %arg0, %c2_i32 : i32
    %1 = tpu.assume_multiple %0, 2 : i32
    %c256_i32 = arith.constant 256 : i32
    %2 = arith.muli %arg1, %c256_i32 : i32
    %3 = tpu.assume_multiple %2, 256 : i32
    %c0_i32 = arith.constant 0 : i32
    %c0_i32_0 = arith.constant 0 : i32
    %4 = tpu.memref_slice %arg2[%1, %c0_i32_0, %3] : memref<2x4x256xf32, #tpu.memory_space<any>> -> memref<2x4x256xf32, #tpu.memory_space<any>>
    %c0_i32_1 = arith.constant 0 : i32
    %c0_i32_2 = arith.constant 0 : i32
    %c0_i32_3 = arith.constant 0 : i32
    %5 = tpu.memref_slice %arg5[%c0_i32_1, %c0_i32_2, %c0_i32_3] : memref<2x12x256xf32, #tpu.memory_space<vmem>> -> memref<2x4x256xf32, #tpu.memory_space<vmem>>
    %6 = tpu.memref_slice %arg6[%c0_i32] : memref<3x!tpu.dma_semaphore, #tpu.memory_space<semaphore_mem>> -> memref<1x!tpu.dma_semaphore, #tpu.memory_space<semaphore_mem>>
    %7 = tpu.memref_squeeze %6 : memref<1x!tpu.dma_semaphore, #tpu.memory_space<semaphore_mem>> -> memref<!tpu.dma_semaphore, #tpu.memory_space<semaphore_mem>>
    tpu.enqueue_dma source(%4 : memref<2x4x256xf32, #tpu.memory_space<any>>) target(%5 : memref<2x4x256xf32, #tpu.memory_space<vmem>>) target_semaphore(%7 : memref<!tpu.dma_semaphore, #tpu.memory_space<semaphore_mem>>)
    %c1_i32 = arith.constant 1 : i32
    %c0_i32_4 = arith.constant 0 : i32
    %8 = tpu.memref_slice %arg3[%1, %c0_i32_4, %3] : memref<2x6x256xf32, #tpu.memory_space<any>> -> memref<2x6x256xf32, #tpu.memory_space<any>>
    %c0_i32_5 = arith.constant 0 : i32
    %c4_i32 = arith.constant 4 : i32
    %c0_i32_6 = arith.constant 0 : i32
    %9 = tpu.memref_slice %arg5[%c0_i32_5, %c4_i32, %c0_i32_6] : memref<2x12x256xf32, #tpu.memory_space<vmem>> -> memref<2x6x256xf32, #tpu.memory_space<vmem>>
    %10 = tpu.memref_slice %arg6[%c1_i32] : memref<3x!tpu.dma_semaphore, #tpu.memory_space<semaphore_mem>> -> memref<1x!tpu.dma_semaphore, #tpu.memory_space<semaphore_mem>>
    %11 = tpu.memref_squeeze %10 : memref<1x!tpu.dma_semaphore, #tpu.memory_space<semaphore_mem>> -> memref<!tpu.dma_semaphore, #tpu.memory_space<semaphore_mem>>
    tpu.enqueue_dma source(%8 : memref<2x6x256xf32, #tpu.memory_space<any>>) target(%9 : memref<2x6x256xf32, #tpu.memory_space<vmem>>) target_semaphore(%11 : memref<!tpu.dma_semaphore, #tpu.memory_space<semaphore_mem>>)
    %c2_i32_7 = arith.constant 2 : i32
    %c0_i32_8 = arith.constant 0 : i32
    %12 = tpu.memref_slice %arg4[%1, %c0_i32_8, %3] : memref<2x2x256xf32, #tpu.memory_space<any>> -> memref<2x2x256xf32, #tpu.memory_space<any>>
    %c0_i32_9 = arith.constant 0 : i32
    %c10_i32 = arith.constant 10 : i32
    %c0_i32_10 = arith.constant 0 : i32
    %13 = tpu.memref_slice %arg5[%c0_i32_9, %c10_i32, %c0_i32_10] : memref<2x12x256xf32, #tpu.memory_space<vmem>> -> memref<2x2x256xf32, #tpu.memory_space<vmem>>
    %14 = tpu.memref_slice %arg6[%c2_i32_7] : memref<3x!tpu.dma_semaphore, #tpu.memory_space<semaphore_mem>> -> memref<1x!tpu.dma_semaphore, #tpu.memory_space<semaphore_mem>>
    %15 = tpu.memref_squeeze %14 : memref<1x!tpu.dma_semaphore, #tpu.memory_space<semaphore_mem>> -> memref<!tpu.dma_semaphore, #tpu.memory_space<semaphore_mem>>
    tpu.enqueue_dma source(%12 : memref<2x2x256xf32, #tpu.memory_space<any>>) target(%13 : memref<2x2x256xf32, #tpu.memory_space<vmem>>) target_semaphore(%15 : memref<!tpu.dma_semaphore, #tpu.memory_space<semaphore_mem>>)
    %c0_i32_11 = arith.constant 0 : i32
    %c0_i32_12 = arith.constant 0 : i32
    %16 = tpu.memref_slice %arg2[%1, %c0_i32_12, %3] : memref<2x4x256xf32, #tpu.memory_space<any>> -> memref<2x4x256xf32, #tpu.memory_space<any>>
    %c0_i32_13 = arith.constant 0 : i32
    %c0_i32_14 = arith.constant 0 : i32
    %c0_i32_15 = arith.constant 0 : i32
    %17 = tpu.memref_slice %arg5[%c0_i32_13, %c0_i32_14, %c0_i32_15] : memref<2x12x256xf32, #tpu.memory_space<vmem>> -> memref<2x4x256xf32, #tpu.memory_space<vmem>>
    %18 = tpu.memref_slice %arg6[%c0_i32_11] : memref<3x!tpu.dma_semaphore, #tpu.memory_space<semaphore_mem>> -> memref<1x!tpu.dma_semaphore, #tpu.memory_space<semaphore_mem>>
    %19 = tpu.memref_squeeze %18 : memref<1x!tpu.dma_semaphore, #tpu.memory_space<semaphore_mem>> -> memref<!tpu.dma_semaphore, #tpu.memory_space<semaphore_mem>>
    tpu.wait_dma2 semaphore(%19 : memref<!tpu.dma_semaphore, #tpu.memory_space<semaphore_mem>>) src(%16 : memref<2x4x256xf32, #tpu.memory_space<any>>) dst(%17 : memref<2x4x256xf32, #tpu.memory_space<vmem>>)
    %c1_i32_16 = arith.constant 1 : i32
    %c0_i32_17 = arith.constant 0 : i32
    %20 = tpu.memref_slice %arg3[%1, %c0_i32_17, %3] : memref<2x6x256xf32, #tpu.memory_space<any>> -> memref<2x6x256xf32, #tpu.memory_space<any>>
    %c0_i32_18 = arith.constant 0 : i32
    %c4_i32_19 = arith.constant 4 : i32
    %c0_i32_20 = arith.constant 0 : i32
    %21 = tpu.memref_slice %arg5[%c0_i32_18, %c4_i32_19, %c0_i32_20] : memref<2x12x256xf32, #tpu.memory_space<vmem>> -> memref<2x6x256xf32, #tpu.memory_space<vmem>>
    %22 = tpu.memref_slice %arg6[%c1_i32_16] : memref<3x!tpu.dma_semaphore, #tpu.memory_space<semaphore_mem>> -> memref<1x!tpu.dma_semaphore, #tpu.memory_space<semaphore_mem>>
    %23 = tpu.memref_squeeze %22 : memref<1x!tpu.dma_semaphore, #tpu.memory_space<semaphore_mem>> -> memref<!tpu.dma_semaphore, #tpu.memory_space<semaphore_mem>>
    tpu.wait_dma2 semaphore(%23 : memref<!tpu.dma_semaphore, #tpu.memory_space<semaphore_mem>>) src(%20 : memref<2x6x256xf32, #tpu.memory_space<any>>) dst(%21 : memref<2x6x256xf32, #tpu.memory_space<vmem>>)
    %c2_i32_21 = arith.constant 2 : i32
    %c0_i32_22 = arith.constant 0 : i32
    %24 = tpu.memref_slice %arg4[%1, %c0_i32_22, %3] : memref<2x2x256xf32, #tpu.memory_space<any>> -> memref<2x2x256xf32, #tpu.memory_space<any>>
    %c0_i32_23 = arith.constant 0 : i32
    %c10_i32_24 = arith.constant 10 : i32
    %c0_i32_25 = arith.constant 0 : i32
    %25 = tpu.memref_slice %arg5[%c0_i32_23, %c10_i32_24, %c0_i32_25] : memref<2x12x256xf32, #tpu.memory_space<vmem>> -> memref<2x2x256xf32, #tpu.memory_space<vmem>>
    %26 = tpu.memref_slice %arg6[%c2_i32_21] : memref<3x!tpu.dma_semaphore, #tpu.memory_space<semaphore_mem>> -> memref<1x!tpu.dma_semaphore, #tpu.memory_space<semaphore_mem>>
    %27 = tpu.memref_squeeze %26 : memref<1x!tpu.dma_semaphore, #tpu.memory_space<semaphore_mem>> -> memref<!tpu.dma_semaphore, #tpu.memory_space<semaphore_mem>>
    tpu.wait_dma2 semaphore(%27 : memref<!tpu.dma_semaphore, #tpu.memory_space<semaphore_mem>>) src(%24 : memref<2x2x256xf32, #tpu.memory_space<any>>) dst(%25 : memref<2x2x256xf32, #tpu.memory_space<vmem>>)
    return
  }
  func.func @transform_3(%arg0: i32, %arg1: i32) -> (i32, i32, i32) {
    %c0_i32 = arith.constant 0 : i32
    %c0_i32_0 = arith.constant 0 : i32
    return %arg0, %c0_i32, %arg1 : i32, i32, i32
  }
}

module attributes {stable_mosaic.version = 11 : i64} {
  func.func @_concat_sublane_kernel(%arg0: i32, %arg1: i32, %arg2: memref<2x4x256xf32, #tpu.memory_space<vmem>>, %arg3: memref<2x6x256xf32, #tpu.memory_space<vmem>>, %arg4: memref<2x2x256xf32, #tpu.memory_space<vmem>>, %arg5: memref<2x12x256xf32, #tpu.memory_space<vmem>>) attributes {dimension_semantics = [#tpu.dimension_semantics<parallel>, #tpu.dimension_semantics<parallel>], iteration_bounds = array<i64: 1, 1>, scalar_prefetch = 0 : i64, scratch_operands = 0 : i64, tpu.core_type = #tpu.core_type<tc>, window_params = [{transform_indices = @transform_0, window_bounds = array<i64: 2, 4, 256>}, {transform_indices = @transform_1, window_bounds = array<i64: 2, 6, 256>}, {transform_indices = @transform_2, window_bounds = array<i64: 2, 2, 256>}, {transform_indices = @transform_3, window_bounds = array<i64: 2, 12, 256>}]} {
    %c0 = arith.constant 0 : index
    %c0_0 = arith.constant 0 : index
    %c0_1 = arith.constant 0 : index
    %0 = vector.load %arg2[%c0, %c0_0, %c0_1] : memref<2x4x256xf32, #tpu.memory_space<vmem>>, vector<2x4x256xf32>
    %c0_2 = arith.constant 0 : index
    %c0_3 = arith.constant 0 : index
    %c0_4 = arith.constant 0 : index
    %1 = vector.load %arg5[%c0_2, %c0_3, %c0_4] : memref<2x12x256xf32, #tpu.memory_space<vmem>>, vector<2x4x256xf32>
    tpu.vector_store %arg5[%c0_2, %c0_3, %c0_4], %0 {strides = array<i32>} : memref<2x12x256xf32, #tpu.memory_space<vmem>>, vector<2x4x256xf32>,
    %c0_5 = arith.constant 0 : index
    %c0_6 = arith.constant 0 : index
    %c0_7 = arith.constant 0 : index
    %2 = vector.load %arg3[%c0_5, %c0_6, %c0_7] : memref<2x6x256xf32, #tpu.memory_space<vmem>>, vector<2x6x256xf32>
    %c0_8 = arith.constant 0 : index
    %c4 = arith.constant 4 : index
    %c0_9 = arith.constant 0 : index
    %3 = vector.load %arg5[%c0_8, %c4, %c0_9] : memref<2x12x256xf32, #tpu.memory_space<vmem>>, vector<2x6x256xf32>
    tpu.vector_store %arg5[%c0_8, %c4, %c0_9], %2 {strides = array<i32>} : memref<2x12x256xf32, #tpu.memory_space<vmem>>, vector<2x6x256xf32>,
    %c0_10 = arith.constant 0 : index
    %c0_11 = arith.constant 0 : index
    %c0_12 = arith.constant 0 : index
    %4 = vector.load %arg4[%c0_10, %c0_11, %c0_12] : memref<2x2x256xf32, #tpu.memory_space<vmem>>, vector<2x2x256xf32>
    %c0_13 = arith.constant 0 : index
    %c10 = arith.constant 10 : index
    %c0_14 = arith.constant 0 : index
    %5 = vector.load %arg5[%c0_13, %c10, %c0_14] : memref<2x12x256xf32, #tpu.memory_space<vmem>>, vector<2x2x256xf32>
    tpu.vector_store %arg5[%c0_13, %c10, %c0_14], %4 {strides = array<i32>} : memref<2x12x256xf32, #tpu.memory_space<vmem>>, vector<2x2x256xf32>,
    return
  }
  func.func @transform_0(%arg0: i32, %arg1: i32) -> (i32, i32, i32) {
    %c0_i32 = arith.constant 0 : i32
    %c0_i32_0 = arith.constant 0 : i32
    return %arg0, %c0_i32, %arg1 : i32, i32, i32
  }
  func.func @transform_1(%arg0: i32, %arg1: i32) -> (i32, i32, i32) {
    %c0_i32 = arith.constant 0 : i32
    %c0_i32_0 = arith.constant 0 : i32
    return %arg0, %c0_i32, %arg1 : i32, i32, i32
  }
  func.func @transform_2(%arg0: i32, %arg1: i32) -> (i32, i32, i32) {
    %c0_i32 = arith.constant 0 : i32
    %c0_i32_0 = arith.constant 0 : i32
    return %arg0, %c0_i32, %arg1 : i32, i32, i32
  }
  func.func @transform_3(%arg0: i32, %arg1: i32) -> (i32, i32, i32) {
    %c0_i32 = arith.constant 0 : i32
    %c0_i32_0 = arith.constant 0 : i32
    return %arg0, %c0_i32, %arg1 : i32, i32, i32
  }
}

</mosaic_0001>

<bundles_post_ra>
// kernel: tpu_custom_call.1
= control target key start
LH: loop header
LB: loop body
LE: loop exit
PB: predicated region body
PF: predicated region fallthrough
CT: control target
= control target key end

     0   :  { %v58_v0 = vlaneseq  ;;  %v91_v4 = vmov 1983009808   ;;  %s172_s0 = inlined_call_operand.vmem [shape: f32[2,4,256], index: 0, kind: input, shape index: {}]   ;;  %s173_s3 = inlined_call_operand.vmem [shape: f32[2,12,256], index: 3, kind: output, shape index: {}]   ;;  %s174_s1 = inlined_call_operand.vmem [shape: f32[2,6,256], index: 1, kind: input, shape index: {}]   ;;  %s175_s2 = inlined_call_operand.vmem [shape: f32[2,2,256], index: 2, kind: input, shape index: {}]  }
   0x1   :  { %v14_v1 = vld [vmem:[%s172_s0] sm:$0xff]  ;;  %v15_v2 = vld [vmem:[%s172_s0 + $0x8] sm:$0xff]  ;;  %v56_v5 = vunpack.c.l.s4 %v91_v4  ;;  %v28_v10 = vld [vmem:[%s174_s1 + $0x10] sm:$0x3f] }
   0x2   :  { %v26_v3 = vld [vmem:[%s174_s1] sm:$0x3f]  ;;  %22 = vst [vmem:[%s173_s3] sm:$0xf] %v14_v1  ;;  %v18_v6 = vcombine.high %v14_v1, %v14_v1  ;;  %24 = vst [vmem:[%s173_s3 + $0x20] sm:$0xf] %v15_v2  ;;  %v19_v7 = vcombine.high %v15_v2, %v15_v2  ;;  %v59_v11 = vshrl.u32 %v58_v0, 7 }
   0x3   :  { %v34_v8 = vrot.slane %v26_v3, 4  ;;  %v27_v9 = vld [vmem:[%s174_s1 + $0x8] sm:$0x3f]  ;;  %v36_v13 = vrot.slane %v28_v10, 4  ;;  %v29_v14 = vld [vmem:[%s174_s1 + $0x18] sm:$0x3f]  ;;  %v57_v15 = vunpack.c.0.s8 %v56_v5 }
   0x4   :  { %v35_v12 = vrot.slane %v27_v9, 4  ;;  %23 = vst [vmem:[%s173_s3 + $0x8] sm:$0xf] %v18_v6  ;;  %25 = vst [vmem:[%s173_s3 + $0x28] sm:$0xf] %v19_v7  ;;  %v37_v16 = vrot.slane %v29_v14, 4 }
   0x5   :  { %42 = vst [vmem:[%s173_s3 + $0x10] ss:$-12 sps:$4 sm:$0xf3] %v34_v8   ;;  %v89_v17 = vld [vmem:[%s175_s2] ss:$0 sps:$4 sm:$0xff]   ;;  %v60_v18 = vsub.s32 %v57_v15, %v59_v11 }
   0x6   :  { %43 = vst [vmem:[%s173_s3 + $0x18] ss:$-12 sps:$4 sm:$0xf3] %v35_v12   ;;  %46 = vst [vmem:[%s173_s3 + $0x30] ss:$-12 sps:$4 sm:$0xf3] %v36_v13  }
   0x7   :  { %v90_v19 = vld [vmem:[%s175_s2 + $0x4] ss:$0 sps:$4 sm:$0xff]   ;;  %47 = vst [vmem:[%s173_s3 + $0x38] ss:$-12 sps:$4 sm:$0xf3] %v37_v16   ;;  %v61_v20 = vrot.slane %v89_v17, %v60_v18 }
   0x8   :  { %84 = vst.sshfl [vmem:[%s173_s3 + $0x10] sm:$0x30 pattern:$0x76325410] %v89_v17  ;;  %v70_v21 = vrot.slane %v90_v19, %v60_v18 }
   0x9   :  { %85 = vst.sshfl [vmem:[%s173_s3 + $0x30] sm:$0x30 pattern:$0x76325410] %v90_v19  ;;  %v62_v22 = vcombine.high %v61_v20, %v61_v20 }
   0xa   :  { %v71_v23 = vcombine.high %v70_v21, %v70_v21 }
   0xb   :  { %77 = vst [vmem:[%s173_s3 + $0x18] sm:$0xc] %v62_v22 }
   0xc   :  { %79 = vst [vmem:[%s173_s3 + $0x38] sm:$0xc] %v71_v23 }

</bundles_post_ra>
